<compile_context>
chip_gen: v6e
topology: v6e:2x2x1
jax: 0.10.0
libtpu: 0.0.40
codegen_flags: <defaults>
</compile_context>

<pallas_src>
import jax
import jax.numpy as jnp
from jax.experimental import pallas as pl
from jax.experimental.pallas import tpu as pltpu

LN_EPS = 1e-5


# ----------------------------- kernel helpers ------------------------------

def _seg_layernorm(x, m1, m2, inv_width, gamma, beta):
    """LayerNorm applied independently to two contiguous lane segments.

    x:      (B, 2*W) with segment 1 = lanes [0, W), segment 2 = lanes [W, 2W)
    m1, m2: 0/1 float masks of shape (B, 2*W) selecting each segment
    gamma, beta: (1, 2*W) stacked per-segment affine parameters
    """
    xm1 = x * m1
    xm2 = x * m2
    mu1 = jnp.sum(xm1, axis=-1, keepdims=True) * inv_width
    mu2 = jnp.sum(xm2, axis=-1, keepdims=True) * inv_width
    ex2_1 = jnp.sum(xm1 * x, axis=-1, keepdims=True) * inv_width
    ex2_2 = jnp.sum(xm2 * x, axis=-1, keepdims=True) * inv_width
    mu = mu1 * m1 + mu2 * m2
    ex2 = ex2_1 * m1 + ex2_2 * m2
    var = ex2 - mu * mu
    xhat = (x - mu) * jax.lax.rsqrt(var + LN_EPS)
    return xhat * gamma + beta


def double_critic_kernel(
    state_ref, action_ref,
    ws_ref, bs_ref, gs_ref, bts_ref,            # state branch  (stacked on lanes)
    wa_ref, ba_ref, ga_ref, bta_ref,            # action branch (stacked on lanes)
    wc1s_ref, wc1a_ref, bc1_ref, gc_ref, btc_ref,  # combined layer (block-diag)
    wc2_ref,                                    # (1, 2*H)  final weights, both critics
    bc2_ref,                                    # (2,) in SMEM
    out_ref,                                    # (TILE_B, 2)
):
    s = state_ref[...]                 # (TB, S)
    a = action_ref[...]                # (TB, A)
    tb = s.shape[0]
    hh2 = ws_ref.shape[1]              # 2 * Hh
    hh = hh2 // 2
    h2 = wc1s_ref.shape[1]             # 2 * H
    h = h2 // 2

    # Segment masks (critic 1 = low lanes, critic 2 = high lanes).
    lane_hh = jax.lax.broadcasted_iota(jnp.int32, (tb, hh2), 1)
    mhh1 = (lane_hh < hh).astype(jnp.float32)
    mhh2 = 1.0 - mhh1
    lane_h = jax.lax.broadcasted_iota(jnp.int32, (tb, h2), 1)
    mh1 = (lane_h < h).astype(jnp.float32)
    mh2 = 1.0 - mh1

    # state_net for both critics: Linear -> ReLU -> LayerNorm (segmented).
    hs = jnp.dot(s, ws_ref[...], preferred_element_type=jnp.float32) + bs_ref[...]
    hs = jnp.maximum(hs, 0.0)
    hs = _seg_layernorm(hs, mhh1, mhh2, 1.0 / hh, gs_ref[...], bts_ref[...])

    # action_net for both critics.
    ha = jnp.dot(a, wa_ref[...], preferred_element_type=jnp.float32) + ba_ref[...]
    ha = jnp.maximum(ha, 0.0)
    ha = _seg_layernorm(ha, mhh1, mhh2, 1.0 / hh, ga_ref[...], bta_ref[...])

    # combined_net Linear(H, H) for both critics via block-diagonal weights
    # (concat([hs, ha]) @ Wc1 fused as split matmuls).
    hc = (jnp.dot(hs, wc1s_ref[...], preferred_element_type=jnp.float32)
          + jnp.dot(ha, wc1a_ref[...], preferred_element_type=jnp.float32)
          + bc1_ref[...])
    hc = jnp.maximum(hc, 0.0)
    hc = _seg_layernorm(hc, mh1, mh2, 1.0 / h, gc_ref[...], btc_ref[...])

    # Final Linear(H, 1) per critic as VPU multiply + lane reduction.
    prod = hc * wc2_ref[...]
    q1 = jnp.sum(prod * mh1, axis=-1, keepdims=True) + bc2_ref[0]   # (TB, 1)
    q2 = jnp.sum(prod * mh2, axis=-1, keepdims=True) + bc2_ref[1]   # (TB, 1)

    lane2 = jax.lax.broadcasted_iota(jnp.int32, (tb, 2), 1)
    out_ref[...] = jnp.where(lane2 == 0, q1, q2)                    # (TB, 2)


# ------------------------------- wrapper ------------------------------------

def double_critic_pallas(state, action, packed, *, tile_b=256):
    """state: (B, S), action: (B, A); packed: critic-stacked params from pack_params.
    Returns (q1, q2), each (B, 1)."""
    B, S = state.shape
    _, A = action.shape
    hh2 = packed["ws"].shape[1]       # 2 * Hh
    h2 = packed["wc1s"].shape[1]      # 2 * H
    tb = min(tile_b, B)
    grid = (pl.cdiv(B, tb),)

    def batch_spec(cols):
        return pl.BlockSpec((tb, cols), lambda b: (b, 0))

    def resident(shape):   # weights: ignore batch index -> stay resident in VMEM
        return pl.BlockSpec(shape, lambda b: (0, 0))

    in_specs = [
        batch_spec(S),
        batch_spec(A),
        resident((S, hh2)), resident((1, hh2)), resident((1, hh2)), resident((1, hh2)),
        resident((A, hh2)), resident((1, hh2)), resident((1, hh2)), resident((1, hh2)),
        resident((hh2, h2)), resident((hh2, h2)),
        resident((1, h2)), resident((1, h2)), resident((1, h2)),
        resident((1, h2)),
        pl.BlockSpec(memory_space=pltpu.MemorySpace.SMEM),   # bc2 scalars
    ]

    out = pl.pallas_call(
        double_critic_kernel,
        grid=grid,
        in_specs=in_specs,
        out_specs=pl.BlockSpec((tb, 2), lambda b: (b, 0)),
        out_shape=jax.ShapeDtypeStruct((B, 2), jnp.float32),
        compiler_params=pltpu.CompilerParams(
            dimension_semantics=("parallel",)),
    )(
        state, action,
        packed["ws"], packed["bs"], packed["gs"], packed["bts"],
        packed["wa"], packed["ba"], packed["ga"], packed["bta"],
        packed["wc1s"], packed["wc1a"], packed["bc1"], packed["gc"], packed["btc"],
        packed["wc2"], packed["bc2"],
    )
    return out[:, 0:1], out[:, 1:2]


# ------------------------ parameter packing / reference ---------------------

def pack_params(params):
    """Repack per-critic params (leading critic dim of 2) into lane-stacked /
    block-diagonal form consumed by the fused kernel.  Do this once."""
    def cat_lane(x):           # (2, 1, F) -> (1, 2F)
        return jnp.concatenate([x[0], x[1]], axis=-1)

    def block_diag(x):         # (2, K, N) -> (2K, 2N)
        k, n = x.shape[1], x.shape[2]
        z = jnp.zeros((k, n), x.dtype)
        top = jnp.concatenate([x[0], z], axis=1)
        bot = jnp.concatenate([z, x[1]], axis=1)
        return jnp.concatenate([top, bot], axis=0)

    return {
        "ws":   jnp.concatenate([params["ws"][0], params["ws"][1]], axis=1),
        "bs":   cat_lane(params["bs"]),
        "gs":   cat_lane(params["gs"]),
        "bts":  cat_lane(params["bts"]),
        "wa":   jnp.concatenate([params["wa"][0], params["wa"][1]], axis=1),
        "ba":   cat_lane(params["ba"]),
        "ga":   cat_lane(params["ga"]),
        "bta":  cat_lane(params["bta"]),
        "wc1s": block_diag(params["wc1s"]),
        "wc1a": block_diag(params["wc1a"]),
        "bc1":  cat_lane(params["bc1"]),
        "gc":   cat_lane(params["gc"]),
        "btc":  cat_lane(params["btc"]),
        "wc2":  jnp.concatenate([params["wc2"][0].T, params["wc2"][1].T], axis=1),
        "bc2":  jnp.concatenate([params["bc2"][0].reshape(-1),
                                 params["bc2"][1].reshape(-1)]),
    }


def _layernorm_ref(x, gamma, beta):
    mu = jnp.mean(x, axis=-1, keepdims=True)
    var = jnp.mean((x - mu) ** 2, axis=-1, keepdims=True)
    return (x - mu) * jax.lax.rsqrt(var + LN_EPS) * gamma + beta


def double_critic_ref(state, action, params):
    """Pure-JAX reference matching the PyTorch forward (per-critic params)."""
    outs = []
    for c in range(2):
        hs = jax.nn.relu(state @ params["ws"][c] + params["bs"][c])
        hs = _layernorm_ref(hs, params["gs"][c], params["bts"][c])
        ha = jax.nn.relu(action @ params["wa"][c] + params["ba"][c])
        ha = _layernorm_ref(ha, params["ga"][c], params["bta"][c])
        h = jnp.concatenate([hs, ha], axis=1)
        wc1 = jnp.concatenate([params["wc1s"][c], params["wc1a"][c]], axis=0)
        hc = jax.nn.relu(h @ wc1 + params["bc1"][c])
        hc = _layernorm_ref(hc, params["gc"][c], params["btc"][c])
        outs.append(hc @ params["wc2"][c] + params["bc2"][c])
    return outs[0], outs[1]


def init_params(key, state_size, action_size, hidden_size):
    Hh = hidden_size // 2
    H = hidden_size
    keys = jax.random.split(key, 16)

    def w(k, shape, scale=0.1):
        return (scale * jax.random.normal(k, shape)).astype(jnp.float32)

    return {
        # weights stored as (critic, in, out) so the kernel does x @ W
        "ws":   w(keys[0], (2, state_size, Hh)),
        "bs":   w(keys[1], (2, 1, Hh)),
        "gs":   jnp.ones((2, 1, Hh), jnp.float32) + w(keys[2], (2, 1, Hh), 0.01),
        "bts":  w(keys[3], (2, 1, Hh), 0.01),
        "wa":   w(keys[4], (2, action_size, Hh)),
        "ba":   w(keys[5], (2, 1, Hh)),
        "ga":   jnp.ones((2, 1, Hh), jnp.float32) + w(keys[6], (2, 1, Hh), 0.01),
        "bta":  w(keys[7], (2, 1, Hh), 0.01),
        "wc1s": w(keys[8], (2, Hh, H)),
        "wc1a": w(keys[9], (2, Hh, H)),
        "bc1":  w(keys[10], (2, 1, H)),
        "gc":   jnp.ones((2, 1, H), jnp.float32) + w(keys[11], (2, 1, H), 0.01),
        "btc":  w(keys[12], (2, 1, H), 0.01),
        "wc2":  w(keys[13], (2, H, 1)),
        "bc2":  w(keys[14], (2, 1, 1)),
    }


if __name__ == "__main__":
    key = jax.random.PRNGKey(0)
    k_state, k_action, k_params = jax.random.split(key, 3)

    batch = 2
    state_size = 12
    action_size = 4
    hidden_size = 32

    state = jax.random.normal(k_state, (batch, state_size), dtype=jnp.float32)
    action = jax.random.normal(k_action, (batch, action_size), dtype=jnp.float32)
    params = init_params(k_params, state_size, action_size, hidden_size)
    packed = pack_params(params)

    q1, q2 = double_critic_pallas(state, action, packed)
    q1 = jax.block_until_ready(q1)
    q2 = jax.block_until_ready(q2)

    r1, r2 = double_critic_ref(state, action, params)
    assert q1.shape == (batch, 1) and q2.shape == (batch, 1)
    assert jnp.allclose(q1, r1, atol=1e-4, rtol=1e-4)
    assert jnp.allclose(q2, r2, atol=1e-4, rtol=1e-4)
    print("KERNEL_OK")
</pallas_src>

<mosaic_0001>
module attributes {stable_mosaic.version = 11 : i64} {
  func.func @double_critic_kernel(%arg0: i32, %arg1: memref<2x12xf32, #tpu.memory_space<vmem>>, %arg2: memref<2x4xf32, #tpu.memory_space<vmem>>, %arg3: memref<12x32xf32, #tpu.memory_space<vmem>>, %arg4: memref<1x32xf32, #tpu.memory_space<vmem>>, %arg5: memref<1x32xf32, #tpu.memory_space<vmem>>, %arg6: memref<1x32xf32, #tpu.memory_space<vmem>>, %arg7: memref<4x32xf32, #tpu.memory_space<vmem>>, %arg8: memref<1x32xf32, #tpu.memory_space<vmem>>, %arg9: memref<1x32xf32, #tpu.memory_space<vmem>>, %arg10: memref<1x32xf32, #tpu.memory_space<vmem>>, %arg11: memref<32x64xf32, #tpu.memory_space<vmem>>, %arg12: memref<32x64xf32, #tpu.memory_space<vmem>>, %arg13: memref<1x64xf32, #tpu.memory_space<vmem>>, %arg14: memref<1x64xf32, #tpu.memory_space<vmem>>, %arg15: memref<1x64xf32, #tpu.memory_space<vmem>>, %arg16: memref<1x64xf32, #tpu.memory_space<vmem>>, %arg17: memref<2xf32, #tpu.memory_space<smem>>, %arg18: memref<2x2xf32, #tpu.memory_space<vmem>>) attributes {dimension_semantics = [#tpu.dimension_semantics<parallel>], iteration_bounds = array<i64: 1>, scalar_prefetch = 0 : i64, scratch_operands = 0 : i64, tpu.core_type = #tpu.core_type<tc>, window_params = [{transform_indices = @transform_0, window_bounds = array<i64: 2, 12>}, {transform_indices = @transform_1, window_bounds = array<i64: 2, 4>}, {pipeline_mode = #tpu.pipeline_mode<synchronous>, transform_indices = @transform_2, window_bounds = array<i64: 12, 32>}, {pipeline_mode = #tpu.pipeline_mode<synchronous>, transform_indices = @transform_3, window_bounds = array<i64: 1, 32>}, {pipeline_mode = #tpu.pipeline_mode<synchronous>, transform_indices = @transform_4, window_bounds = array<i64: 1, 32>}, {pipeline_mode = #tpu.pipeline_mode<synchronous>, transform_indices = @transform_5, window_bounds = array<i64: 1, 32>}, {pipeline_mode = #tpu.pipeline_mode<synchronous>, transform_indices = @transform_6, window_bounds = array<i64: 4, 32>}, {pipeline_mode = #tpu.pipeline_mode<synchronous>, transform_indices = @transform_7, window_bounds = array<i64: 1, 32>}, {pipeline_mode = #tpu.pipeline_mode<synchronous>, transform_indices = @transform_8, window_bounds = array<i64: 1, 32>}, {pipeline_mode = #tpu.pipeline_mode<synchronous>, transform_indices = @transform_9, window_bounds = array<i64: 1, 32>}, {pipeline_mode = #tpu.pipeline_mode<synchronous>, transform_indices = @transform_10, window_bounds = array<i64: 32, 64>}, {pipeline_mode = #tpu.pipeline_mode<synchronous>, transform_indices = @transform_11, window_bounds = array<i64: 32, 64>}, {pipeline_mode = #tpu.pipeline_mode<synchronous>, transform_indices = @transform_12, window_bounds = array<i64: 1, 64>}, {pipeline_mode = #tpu.pipeline_mode<synchronous>, transform_indices = @transform_13, window_bounds = array<i64: 1, 64>}, {pipeline_mode = #tpu.pipeline_mode<synchronous>, transform_indices = @transform_14, window_bounds = array<i64: 1, 64>}, {pipeline_mode = #tpu.pipeline_mode<synchronous>, transform_indices = @transform_15, window_bounds = array<i64: 1, 64>}, {transform_indices = @transform_16, window_bounds = array<i64: 2>}, {transform_indices = @transform_17, window_bounds = array<i64: 2, 2>}]} {
    %c0 = arith.constant 0 : index
    %c0_0 = arith.constant 0 : index
    %0 = vector.load %arg1[%c0, %c0_0] : memref<2x12xf32, #tpu.memory_space<vmem>>, vector<2x12xf32>
    %c0_1 = arith.constant 0 : index
    %c0_2 = arith.constant 0 : index
    %1 = vector.load %arg2[%c0_1, %c0_2] : memref<2x4xf32, #tpu.memory_space<vmem>>, vector<2x4xf32>
    %2 = tpu.iota {dimensions = array<i32: 1>} : vector<2x32xi32>
    %c16_i32 = arith.constant 16 : i32
    %3 = vector.broadcast %c16_i32 : i32 to vector<2x32xi32>
    %4 = arith.cmpi slt, %2, %3 : vector<2x32xi32>
    %5 = arith.extui %4 : vector<2x32xi1> to vector<2x32xi32>
    %6 = arith.sitofp %5 : vector<2x32xi32> to vector<2x32xf32>
    %cst = arith.constant 1.000000e+00 : f32
    %7 = vector.broadcast %cst : f32 to vector<2x32xf32>
    %8 = arith.subf %7, %6 : vector<2x32xf32>
    %9 = tpu.iota {dimensions = array<i32: 1>} : vector<2x64xi32>
    %c32_i32 = arith.constant 32 : i32
    %10 = vector.broadcast %c32_i32 : i32 to vector<2x64xi32>
    %11 = arith.cmpi slt, %9, %10 : vector<2x64xi32>
    %12 = arith.extui %11 : vector<2x64xi1> to vector<2x64xi32>
    %13 = arith.sitofp %12 : vector<2x64xi32> to vector<2x64xf32>
    %cst_3 = arith.constant 1.000000e+00 : f32
    %14 = vector.broadcast %cst_3 : f32 to vector<2x64xf32>
    %15 = arith.subf %14, %13 : vector<2x64xf32>
    %c0_4 = arith.constant 0 : index
    %c0_5 = arith.constant 0 : index
    %16 = vector.load %arg3[%c0_4, %c0_5] : memref<12x32xf32, #tpu.memory_space<vmem>>, vector<12x32xf32>
    %cst_6 = arith.constant dense<0.000000e+00> : vector<2x32xf32>
    %17 = tpu.matmul %0, %16, %cst_6 {dimension_numbers = #tpu.dot_dimension_numbers<[1], [0], [0], [1], [0, 0, 1, 1], [], []>} : vector<2x12xf32>, vector<12x32xf32>, vector<2x32xf32> -> vector<2x32xf32>
    %c0_7 = arith.constant 0 : index
    %c0_8 = arith.constant 0 : index
    %18 = vector.load %arg4[%c0_7, %c0_8] : memref<1x32xf32, #tpu.memory_space<vmem>>, vector<1x32xf32>
    %19 = vector.broadcast %18 : vector<1x32xf32> to vector<2x32xf32>
    %20 = arith.addf %17, %19 : vector<2x32xf32>
    %cst_9 = arith.constant 0.000000e+00 : f32
    %21 = vector.broadcast %cst_9 : f32 to vector<2x32xf32>
    %22 = arith.maximumf %20, %21 : vector<2x32xf32>
    %c0_10 = arith.constant 0 : index
    %c0_11 = arith.constant 0 : index
    %23 = vector.load %arg5[%c0_10, %c0_11] : memref<1x32xf32, #tpu.memory_space<vmem>>, vector<1x32xf32>
    %c0_12 = arith.constant 0 : index
    %c0_13 = arith.constant 0 : index
    %24 = vector.load %arg6[%c0_12, %c0_13] : memref<1x32xf32, #tpu.memory_space<vmem>>, vector<1x32xf32>
    %25 = arith.mulf %22, %6 : vector<2x32xf32>
    %26 = arith.mulf %22, %8 : vector<2x32xf32>
    %cst_14 = arith.constant dense<0.000000e+00> : vector<2xf32>
    %27 = vector.multi_reduction <add>, %25, %cst_14 [1] : vector<2x32xf32> to vector<2xf32>
    %28 = vector.shape_cast %27 : vector<2xf32> to vector<2x1xf32>
    %cst_15 = arith.constant 6.250000e-02 : f32
    %29 = vector.broadcast %cst_15 : f32 to vector<2x1xf32>
    %30 = arith.mulf %28, %29 : vector<2x1xf32>
    %cst_16 = arith.constant dense<0.000000e+00> : vector<2xf32>
    %31 = vector.multi_reduction <add>, %26, %cst_16 [1] : vector<2x32xf32> to vector<2xf32>
    %32 = vector.shape_cast %31 : vector<2xf32> to vector<2x1xf32>
    %cst_17 = arith.constant 6.250000e-02 : f32
    %33 = vector.broadcast %cst_17 : f32 to vector<2x1xf32>
    %34 = arith.mulf %32, %33 : vector<2x1xf32>
    %35 = arith.mulf %25, %22 : vector<2x32xf32>
    %cst_18 = arith.constant dense<0.000000e+00> : vector<2xf32>
    %36 = vector.multi_reduction <add>, %35, %cst_18 [1] : vector<2x32xf32> to vector<2xf32>
    %37 = vector.shape_cast %36 : vector<2xf32> to vector<2x1xf32>
    %cst_19 = arith.constant 6.250000e-02 : f32
    %38 = vector.broadcast %cst_19 : f32 to vector<2x1xf32>
    %39 = arith.mulf %37, %38 : vector<2x1xf32>
    %40 = arith.mulf %26, %22 : vector<2x32xf32>
    %cst_20 = arith.constant dense<0.000000e+00> : vector<2xf32>
    %41 = vector.multi_reduction <add>, %40, %cst_20 [1] : vector<2x32xf32> to vector<2xf32>
    %42 = vector.shape_cast %41 : vector<2xf32> to vector<2x1xf32>
    %cst_21 = arith.constant 6.250000e-02 : f32
    %43 = vector.broadcast %cst_21 : f32 to vector<2x1xf32>
    %44 = arith.mulf %42, %43 : vector<2x1xf32>
    %45 = vector.broadcast %30 : vector<2x1xf32> to vector<2x32xf32>
    %46 = arith.mulf %45, %6 : vector<2x32xf32>
    %47 = vector.broadcast %34 : vector<2x1xf32> to vector<2x32xf32>
    %48 = arith.mulf %47, %8 : vector<2x32xf32>
    %49 = arith.addf %46, %48 : vector<2x32xf32>
    %50 = vector.broadcast %39 : vector<2x1xf32> to vector<2x32xf32>
    %51 = arith.mulf %50, %6 : vector<2x32xf32>
    %52 = vector.broadcast %44 : vector<2x1xf32> to vector<2x32xf32>
    %53 = arith.mulf %52, %8 : vector<2x32xf32>
    %54 = arith.addf %51, %53 : vector<2x32xf32>
    %55 = arith.mulf %49, %49 : vector<2x32xf32>
    %56 = arith.subf %54, %55 : vector<2x32xf32>
    %57 = arith.subf %22, %49 : vector<2x32xf32>
    %cst_22 = arith.constant 9.99999974E-6 : f32
    %58 = vector.broadcast %cst_22 : f32 to vector<2x32xf32>
    %59 = arith.addf %56, %58 : vector<2x32xf32>
    %60 = math.rsqrt %59 : vector<2x32xf32>
    %61 = arith.mulf %57, %60 : vector<2x32xf32>
    %62 = vector.broadcast %23 : vector<1x32xf32> to vector<2x32xf32>
    %63 = arith.mulf %61, %62 : vector<2x32xf32>
    %64 = vector.broadcast %24 : vector<1x32xf32> to vector<2x32xf32>
    %65 = arith.addf %63, %64 : vector<2x32xf32>
    %c0_23 = arith.constant 0 : index
    %c0_24 = arith.constant 0 : index
    %66 = vector.load %arg7[%c0_23, %c0_24] : memref<4x32xf32, #tpu.memory_space<vmem>>, vector<4x32xf32>
    %cst_25 = arith.constant dense<0.000000e+00> : vector<2x32xf32>
    %67 = tpu.matmul %1, %66, %cst_25 {dimension_numbers = #tpu.dot_dimension_numbers<[1], [0], [0], [1], [0, 0, 1, 1], [], []>} : vector<2x4xf32>, vector<4x32xf32>, vector<2x32xf32> -> vector<2x32xf32>
    %c0_26 = arith.constant 0 : index
    %c0_27 = arith.constant 0 : index
    %68 = vector.load %arg8[%c0_26, %c0_27] : memref<1x32xf32, #tpu.memory_space<vmem>>, vector<1x32xf32>
    %69 = vector.broadcast %68 : vector<1x32xf32> to vector<2x32xf32>
    %70 = arith.addf %67, %69 : vector<2x32xf32>
    %cst_28 = arith.constant 0.000000e+00 : f32
    %71 = vector.broadcast %cst_28 : f32 to vector<2x32xf32>
    %72 = arith.maximumf %70, %71 : vector<2x32xf32>
    %c0_29 = arith.constant 0 : index
    %c0_30 = arith.constant 0 : index
    %73 = vector.load %arg9[%c0_29, %c0_30] : memref<1x32xf32, #tpu.memory_space<vmem>>, vector<1x32xf32>
    %c0_31 = arith.constant 0 : index
    %c0_32 = arith.constant 0 : index
    %74 = vector.load %arg10[%c0_31, %c0_32] : memref<1x32xf32, #tpu.memory_space<vmem>>, vector<1x32xf32>
    %75 = arith.mulf %72, %6 : vector<2x32xf32>
    %76 = arith.mulf %72, %8 : vector<2x32xf32>
    %cst_33 = arith.constant dense<0.000000e+00> : vector<2xf32>
    %77 = vector.multi_reduction <add>, %75, %cst_33 [1] : vector<2x32xf32> to vector<2xf32>
    %78 = vector.shape_cast %77 : vector<2xf32> to vector<2x1xf32>
    %cst_34 = arith.constant 6.250000e-02 : f32
    %79 = vector.broadcast %cst_34 : f32 to vector<2x1xf32>
    %80 = arith.mulf %78, %79 : vector<2x1xf32>
    %cst_35 = arith.constant dense<0.000000e+00> : vector<2xf32>
    %81 = vector.multi_reduction <add>, %76, %cst_35 [1] : vector<2x32xf32> to vector<2xf32>
    %82 = vector.shape_cast %81 : vector<2xf32> to vector<2x1xf32>
    %cst_36 = arith.constant 6.250000e-02 : f32
    %83 = vector.broadcast %cst_36 : f32 to vector<2x1xf32>
    %84 = arith.mulf %82, %83 : vector<2x1xf32>
    %85 = arith.mulf %75, %72 : vector<2x32xf32>
    %cst_37 = arith.constant dense<0.000000e+00> : vector<2xf32>
    %86 = vector.multi_reduction <add>, %85, %cst_37 [1] : vector<2x32xf32> to vector<2xf32>
    %87 = vector.shape_cast %86 : vector<2xf32> to vector<2x1xf32>
    %cst_38 = arith.constant 6.250000e-02 : f32
    %88 = vector.broadcast %cst_38 : f32 to vector<2x1xf32>
    %89 = arith.mulf %87, %88 : vector<2x1xf32>
    %90 = arith.mulf %76, %72 : vector<2x32xf32>
    %cst_39 = arith.constant dense<0.000000e+00> : vector<2xf32>
    %91 = vector.multi_reduction <add>, %90, %cst_39 [1] : vector<2x32xf32> to vector<2xf32>
    %92 = vector.shape_cast %91 : vector<2xf32> to vector<2x1xf32>
    %cst_40 = arith.constant 6.250000e-02 : f32
    %93 = vector.broadcast %cst_40 : f32 to vector<2x1xf32>
    %94 = arith.mulf %92, %93 : vector<2x1xf32>
    %95 = vector.broadcast %80 : vector<2x1xf32> to vector<2x32xf32>
    %96 = arith.mulf %95, %6 : vector<2x32xf32>
    %97 = vector.broadcast %84 : vector<2x1xf32> to vector<2x32xf32>
    %98 = arith.mulf %97, %8 : vector<2x32xf32>
    %99 = arith.addf %96, %98 : vector<2x32xf32>
    %100 = vector.broadcast %89 : vector<2x1xf32> to vector<2x32xf32>
    %101 = arith.mulf %100, %6 : vector<2x32xf32>
    %102 = vector.broadcast %94 : vector<2x1xf32> to vector<2x32xf32>
    %103 = arith.mulf %102, %8 : vector<2x32xf32>
    %104 = arith.addf %101, %103 : vector<2x32xf32>
    %105 = arith.mulf %99, %99 : vector<2x32xf32>
    %106 = arith.subf %104, %105 : vector<2x32xf32>
    %107 = arith.subf %72, %99 : vector<2x32xf32>
    %cst_41 = arith.constant 9.99999974E-6 : f32
    %108 = vector.broadcast %cst_41 : f32 to vector<2x32xf32>
    %109 = arith.addf %106, %108 : vector<2x32xf32>
    %110 = math.rsqrt %109 : vector<2x32xf32>
    %111 = arith.mulf %107, %110 : vector<2x32xf32>
    %112 = vector.broadcast %73 : vector<1x32xf32> to vector<2x32xf32>
    %113 = arith.mulf %111, %112 : vector<2x32xf32>
    %114 = vector.broadcast %74 : vector<1x32xf32> to vector<2x32xf32>
    %115 = arith.addf %113, %114 : vector<2x32xf32>
    %c0_42 = arith.constant 0 : index
    %c0_43 = arith.constant 0 : index
    %116 = vector.load %arg11[%c0_42, %c0_43] : memref<32x64xf32, #tpu.memory_space<vmem>>, vector<32x64xf32>
    %cst_44 = arith.constant dense<0.000000e+00> : vector<2x64xf32>
    %117 = tpu.matmul %65, %116, %cst_44 {dimension_numbers = #tpu.dot_dimension_numbers<[1], [0], [0], [1], [0, 0, 1, 1], [], []>} : vector<2x32xf32>, vector<32x64xf32>, vector<2x64xf32> -> vector<2x64xf32>
    %c0_45 = arith.constant 0 : index
    %c0_46 = arith.constant 0 : index
    %118 = vector.load %arg12[%c0_45, %c0_46] : memref<32x64xf32, #tpu.memory_space<vmem>>, vector<32x64xf32>
    %cst_47 = arith.constant dense<0.000000e+00> : vector<2x64xf32>
    %119 = tpu.matmul %115, %118, %cst_47 {dimension_numbers = #tpu.dot_dimension_numbers<[1], [0], [0], [1], [0, 0, 1, 1], [], []>} : vector<2x32xf32>, vector<32x64xf32>, vector<2x64xf32> -> vector<2x64xf32>
    %120 = arith.addf %117, %119 : vector<2x64xf32>
    %c0_48 = arith.constant 0 : index
    %c0_49 = arith.constant 0 : index
    %121 = vector.load %arg13[%c0_48, %c0_49] : memref<1x64xf32, #tpu.memory_space<vmem>>, vector<1x64xf32>
    %122 = vector.broadcast %121 : vector<1x64xf32> to vector<2x64xf32>
    %123 = arith.addf %120, %122 : vector<2x64xf32>
    %cst_50 = arith.constant 0.000000e+00 : f32
    %124 = vector.broadcast %cst_50 : f32 to vector<2x64xf32>
    %125 = arith.maximumf %123, %124 : vector<2x64xf32>
    %c0_51 = arith.constant 0 : index
    %c0_52 = arith.constant 0 : index
    %126 = vector.load %arg14[%c0_51, %c0_52] : memref<1x64xf32, #tpu.memory_space<vmem>>, vector<1x64xf32>
    %c0_53 = arith.constant 0 : index
    %c0_54 = arith.constant 0 : index
    %127 = vector.load %arg15[%c0_53, %c0_54] : memref<1x64xf32, #tpu.memory_space<vmem>>, vector<1x64xf32>
    %128 = arith.mulf %125, %13 : vector<2x64xf32>
    %129 = arith.mulf %125, %15 : vector<2x64xf32>
    %cst_55 = arith.constant dense<0.000000e+00> : vector<2xf32>
    %130 = vector.multi_reduction <add>, %128, %cst_55 [1] : vector<2x64xf32> to vector<2xf32>
    %131 = vector.shape_cast %130 : vector<2xf32> to vector<2x1xf32>
    %cst_56 = arith.constant 3.125000e-02 : f32
    %132 = vector.broadcast %cst_56 : f32 to vector<2x1xf32>
    %133 = arith.mulf %131, %132 : vector<2x1xf32>
    %cst_57 = arith.constant dense<0.000000e+00> : vector<2xf32>
    %134 = vector.multi_reduction <add>, %129, %cst_57 [1] : vector<2x64xf32> to vector<2xf32>
    %135 = vector.shape_cast %134 : vector<2xf32> to vector<2x1xf32>
    %cst_58 = arith.constant 3.125000e-02 : f32
    %136 = vector.broadcast %cst_58 : f32 to vector<2x1xf32>
    %137 = arith.mulf %135, %136 : vector<2x1xf32>
    %138 = arith.mulf %128, %125 : vector<2x64xf32>
    %cst_59 = arith.constant dense<0.000000e+00> : vector<2xf32>
    %139 = vector.multi_reduction <add>, %138, %cst_59 [1] : vector<2x64xf32> to vector<2xf32>
    %140 = vector.shape_cast %139 : vector<2xf32> to vector<2x1xf32>
    %cst_60 = arith.constant 3.125000e-02 : f32
    %141 = vector.broadcast %cst_60 : f32 to vector<2x1xf32>
    %142 = arith.mulf %140, %141 : vector<2x1xf32>
    %143 = arith.mulf %129, %125 : vector<2x64xf32>
    %cst_61 = arith.constant dense<0.000000e+00> : vector<2xf32>
    %144 = vector.multi_reduction <add>, %143, %cst_61 [1] : vector<2x64xf32> to vector<2xf32>
    %145 = vector.shape_cast %144 : vector<2xf32> to vector<2x1xf32>
    %cst_62 = arith.constant 3.125000e-02 : f32
    %146 = vector.broadcast %cst_62 : f32 to vector<2x1xf32>
    %147 = arith.mulf %145, %146 : vector<2x1xf32>
    %148 = vector.broadcast %133 : vector<2x1xf32> to vector<2x64xf32>
    %149 = arith.mulf %148, %13 : vector<2x64xf32>
    %150 = vector.broadcast %137 : vector<2x1xf32> to vector<2x64xf32>
    %151 = arith.mulf %150, %15 : vector<2x64xf32>
    %152 = arith.addf %149, %151 : vector<2x64xf32>
    %153 = vector.broadcast %142 : vector<2x1xf32> to vector<2x64xf32>
    %154 = arith.mulf %153, %13 : vector<2x64xf32>
    %155 = vector.broadcast %147 : vector<2x1xf32> to vector<2x64xf32>
    %156 = arith.mulf %155, %15 : vector<2x64xf32>
    %157 = arith.addf %154, %156 : vector<2x64xf32>
    %158 = arith.mulf %152, %152 : vector<2x64xf32>
    %159 = arith.subf %157, %158 : vector<2x64xf32>
    %160 = arith.subf %125, %152 : vector<2x64xf32>
    %cst_63 = arith.constant 9.99999974E-6 : f32
    %161 = vector.broadcast %cst_63 : f32 to vector<2x64xf32>
    %162 = arith.addf %159, %161 : vector<2x64xf32>
    %163 = math.rsqrt %162 : vector<2x64xf32>
    %164 = arith.mulf %160, %163 : vector<2x64xf32>
    %165 = vector.broadcast %126 : vector<1x64xf32> to vector<2x64xf32>
    %166 = arith.mulf %164, %165 : vector<2x64xf32>
    %167 = vector.broadcast %127 : vector<1x64xf32> to vector<2x64xf32>
    %168 = arith.addf %166, %167 : vector<2x64xf32>
    %c0_64 = arith.constant 0 : index
    %c0_65 = arith.constant 0 : index
    %169 = vector.load %arg16[%c0_64, %c0_65] : memref<1x64xf32, #tpu.memory_space<vmem>>, vector<1x64xf32>
    %170 = vector.broadcast %169 : vector<1x64xf32> to vector<2x64xf32>
    %171 = arith.mulf %168, %170 : vector<2x64xf32>
    %172 = arith.mulf %171, %13 : vector<2x64xf32>
    %cst_66 = arith.constant dense<0.000000e+00> : vector<2xf32>
    %173 = vector.multi_reduction <add>, %172, %cst_66 [1] : vector<2x64xf32> to vector<2xf32>
    %174 = vector.shape_cast %173 : vector<2xf32> to vector<2x1xf32>
    %c0_67 = arith.constant 0 : index
    %175 = memref.load %arg17[%c0_67] : memref<2xf32, #tpu.memory_space<smem>>
    %176 = vector.broadcast %175 : f32 to vector<2x1xf32>
    %177 = arith.addf %174, %176 : vector<2x1xf32>
    %178 = arith.mulf %171, %15 : vector<2x64xf32>
    %cst_68 = arith.constant dense<0.000000e+00> : vector<2xf32>
    %179 = vector.multi_reduction <add>, %178, %cst_68 [1] : vector<2x64xf32> to vector<2xf32>
    %180 = vector.shape_cast %179 : vector<2xf32> to vector<2x1xf32>
    %c1 = arith.constant 1 : index
    %181 = memref.load %arg17[%c1] : memref<2xf32, #tpu.memory_space<smem>>
    %182 = vector.broadcast %181 : f32 to vector<2x1xf32>
    %183 = arith.addf %180, %182 : vector<2x1xf32>
    %184 = tpu.iota {dimensions = array<i32: 1>} : vector<2x2xi32>
    %c0_i32 = arith.constant 0 : i32
    %185 = vector.broadcast %c0_i32 : i32 to vector<2x2xi32>
    %186 = arith.cmpi eq, %184, %185 : vector<2x2xi32>
    %187 = vector.shape_cast %177 : vector<2x1xf32> to vector<2x1xf32>
    %188 = vector.broadcast %187 : vector<2x1xf32> to vector<2x2xf32>
    %189 = vector.shape_cast %183 : vector<2x1xf32> to vector<2x1xf32>
    %190 = vector.broadcast %189 : vector<2x1xf32> to vector<2x2xf32>
    %191 = arith.select %186, %188, %190 : vector<2x2xi1>, vector<2x2xf32>
    %c0_69 = arith.constant 0 : index
    %c0_70 = arith.constant 0 : index
    %192 = vector.load %arg18[%c0_69, %c0_70] : memref<2x2xf32, #tpu.memory_space<vmem>>, vector<2x2xf32>
    tpu.vector_store %arg18[%c0_69, %c0_70], %191 {strides = array<i32>} : memref<2x2xf32, #tpu.memory_space<vmem>>, vector<2x2xf32>,
    return
  }
  func.func @transform_0(%arg0: i32) -> (i32, i32) {
    %c0_i32 = arith.constant 0 : i32
    %c0_i32_0 = arith.constant 0 : i32
    return %arg0, %c0_i32 : i32, i32
  }
  func.func @transform_1(%arg0: i32) -> (i32, i32) {
    %c0_i32 = arith.constant 0 : i32
    %c0_i32_0 = arith.constant 0 : i32
    return %arg0, %c0_i32 : i32, i32
  }
  func.func @transform_2(%arg0: i32) -> (i32, i32) {
    %c0_i32 = arith.constant 0 : i32
    %c0_i32_0 = arith.constant 0 : i32
    %c0_i32_1 = arith.constant 0 : i32
    return %c0_i32, %c0_i32_0 : i32, i32
  }
  func.func @transform_3(%arg0: i32) -> (i32, i32) {
    %c0_i32 = arith.constant 0 : i32
    %c0_i32_0 = arith.constant 0 : i32
    %c0_i32_1 = arith.constant 0 : i32
    return %c0_i32, %c0_i32_0 : i32, i32
  }
  func.func @transform_4(%arg0: i32) -> (i32, i32) {
    %c0_i32 = arith.constant 0 : i32
    %c0_i32_0 = arith.constant 0 : i32
    %c0_i32_1 = arith.constant 0 : i32
    return %c0_i32, %c0_i32_0 : i32, i32
  }
  func.func @transform_5(%arg0: i32) -> (i32, i32) {
    %c0_i32 = arith.constant 0 : i32
    %c0_i32_0 = arith.constant 0 : i32
    %c0_i32_1 = arith.constant 0 : i32
    return %c0_i32, %c0_i32_0 : i32, i32
  }
  func.func @transform_6(%arg0: i32) -> (i32, i32) {
    %c0_i32 = arith.constant 0 : i32
    %c0_i32_0 = arith.constant 0 : i32
    %c0_i32_1 = arith.constant 0 : i32
    return %c0_i32, %c0_i32_0 : i32, i32
  }
  func.func @transform_7(%arg0: i32) -> (i32, i32) {
    %c0_i32 = arith.constant 0 : i32
    %c0_i32_0 = arith.constant 0 : i32
    %c0_i32_1 = arith.constant 0 : i32
    return %c0_i32, %c0_i32_0 : i32, i32
  }
  func.func @transform_8(%arg0: i32) -> (i32, i32) {
    %c0_i32 = arith.constant 0 : i32
    %c0_i32_0 = arith.constant 0 : i32
    %c0_i32_1 = arith.constant 0 : i32
    return %c0_i32, %c0_i32_0 : i32, i32
  }
  func.func @transform_9(%arg0: i32) -> (i32, i32) {
    %c0_i32 = arith.constant 0 : i32
    %c0_i32_0 = arith.constant 0 : i32
    %c0_i32_1 = arith.constant 0 : i32
    return %c0_i32, %c0_i32_0 : i32, i32
  }
  func.func @transform_10(%arg0: i32) -> (i32, i32) {
    %c0_i32 = arith.constant 0 : i32
    %c0_i32_0 = arith.constant 0 : i32
    %c0_i32_1 = arith.constant 0 : i32
    return %c0_i32, %c0_i32_0 : i32, i32
  }
  func.func @transform_11(%arg0: i32) -> (i32, i32) {
    %c0_i32 = arith.constant 0 : i32
    %c0_i32_0 = arith.constant 0 : i32
    %c0_i32_1 = arith.constant 0 : i32
    return %c0_i32, %c0_i32_0 : i32, i32
  }
  func.func @transform_12(%arg0: i32) -> (i32, i32) {
    %c0_i32 = arith.constant 0 : i32
    %c0_i32_0 = arith.constant 0 : i32
    %c0_i32_1 = arith.constant 0 : i32
    return %c0_i32, %c0_i32_0 : i32, i32
  }
  func.func @transform_13(%arg0: i32) -> (i32, i32) {
    %c0_i32 = arith.constant 0 : i32
    %c0_i32_0 = arith.constant 0 : i32
    %c0_i32_1 = arith.constant 0 : i32
    return %c0_i32, %c0_i32_0 : i32, i32
  }
  func.func @transform_14(%arg0: i32) -> (i32, i32) {
    %c0_i32 = arith.constant 0 : i32
    %c0_i32_0 = arith.constant 0 : i32
    %c0_i32_1 = arith.constant 0 : i32
    return %c0_i32, %c0_i32_0 : i32, i32
  }
  func.func @transform_15(%arg0: i32) -> (i32, i32) {
    %c0_i32 = arith.constant 0 : i32
    %c0_i32_0 = arith.constant 0 : i32
    %c0_i32_1 = arith.constant 0 : i32
    return %c0_i32, %c0_i32_0 : i32, i32
  }
  func.func @transform_16(%arg0: i32) -> i32 {
    %c0_i32 = arith.constant 0 : i32
    %c0_i32_0 = arith.constant 0 : i32
    return %c0_i32 : i32
  }
  func.func @transform_17(%arg0: i32) -> (i32, i32) {
    %c0_i32 = arith.constant 0 : i32
    %c0_i32_0 = arith.constant 0 : i32
    return %arg0, %c0_i32 : i32, i32
  }
}

</mosaic_0001>

<bundles_post_ra>
// kernel: tpu_custom_call.1
= control target key start
LH: loop header
LB: loop body
LE: loop exit
PB: predicated region body
PF: predicated region fallthrough
CT: control target
= control target key end

     0   :  { %s1132_s0 = inlined_call_operand.hbm [shape: f32[2,12], index: 0, kind: input, shape index: {}]   ;;  %s1133_s1 = inlined_call_operand.hbm [shape: f32[2,4], index: 1, kind: input, shape index: {}]   ;;  %s1134_s2 = inlined_call_operand.hbm [shape: f32[12,32], index: 2, kind: input, shape index: {}]   ;;  %s1135_s3 = inlined_call_operand.vmem [shape: f32[1,32], index: 3, kind: input, shape index: {}]   ;;  %s1136_s4 = inlined_call_operand.vmem [shape: f32[1,32], index: 4, kind: input, shape index: {}]   ;;  %s1137_s5 = inlined_call_operand.vmem [shape: f32[1,32], index: 5, kind: input, shape index: {}]   ;;  %s1138_s6 = inlined_call_operand.vmem [shape: f32[4,32], index: 6, kind: input, shape index: {}]   ;;  %s1139_s7 = inlined_call_operand.vmem [shape: f32[1,32], index: 7, kind: input, shape index: {}]   ;;  %s1140_s8 = inlined_call_operand.vmem [shape: f32[1,32], index: 8, kind: input, shape index: {}]   ;;  %s1141_s9 = inlined_call_operand.vmem [shape: f32[1,32], index: 9, kind: input, shape index: {}]   ;;  %s1142_s10 = inlined_call_operand.hbm [shape: f32[32,64], index: 10, kind: input, shape index: {}]   ;;  %s1143_s11 = inlined_call_operand.hbm [shape: f32[32,64], index: 11, kind: input, shape index: {}]   ;;  %s1144_s12 = inlined_call_operand.vmem [shape: f32[1,64], index: 12, kind: input, shape index: {}]   ;;  %s1145_s13 = inlined_call_operand.vmem [shape: f32[1,64], index: 13, kind: input, shape index: {}]   ;;  %s1146_s14 = inlined_call_operand.vmem [shape: f32[1,64], index: 14, kind: input, shape index: {}]   ;;  %s1147_s15 = inlined_call_operand.vmem [shape: f32[1,64], index: 15, kind: input, shape index: {}]   ;;  %s1148_s16 = inlined_call_operand.vmem [shape: f32[2], index: 16, kind: input, shape index: {}]   ;;  %s1149_s17 = inlined_call_operand.hbm [shape: f32[2,2], index: 17, kind: output, shape index: {}]  }
   0x1   :  { %1150 = sst [smem:[#allocation19_spill]] %s1132_s0 }
   0x2   :  { %1151 = sst [smem:[#allocation20_spill]] %s1133_s1 }
   0x3   :  { %22 = vsyncpa [#allocation3], 0 }
   0x4   :  { %23 = vsyncpa [#allocation7], 0 }
   0x5   :  { %24 = vsyncpa [#allocation10], 0 }
   0x6   :  { %25 = vsyncpa [#allocation5], 0 }
   0x7   :  { %26 = vsyncpa [#allocation4], 0  ;;  %s901_s24 = smov [#allocation6]  }
   0x8   :  { %s43_s25 = sshll.u32 %s901_s24, 4  ;;  %s44_s25 = int_to_ptr.vmem [resolvable:$true] %s43_s25 }
   0x9   :  { %s767_s26 = scalar_lea.vmem %s44_s25, 32  ;;  %p772_p1 = scmp.lt.s32.totalorder %s44_s25, %s44_s25 }
   0xa   :  { %p768_p0 = scmp.ne.s32.totalorder %s44_s25, %s767_s26  ;;  %p773_p2 = scmp.lt.s32.totalorder %s767_s26, %s767_s26 }
   0xc   :  { %p774_p3 = por %p773_p2, %p772_p1 }
   0xe   :  { %p775_p4 = pnand %p774_p3, %p768_p0 }
  0x10   :  { %778 = shalt.err (!%p775_p4)
}
  0x11   :  { %s1152_s29 = sld [smem:[#allocation20_spill]]  ;;  %s902_s0 = smov [#allocation9]  }
  0x12   :  { %s78_s30 = sshll.u32 %s902_s0, 4  ;;  %s903_s18 = smov [#allocation2]   ;;  %s79_s30 = int_to_ptr.vmem [resolvable:$true] %s78_s30 }
  0x13   :  { %s33_s19 = sshll.u32 %s903_s18, 4  ;;  %s787_s1 = scalar_lea.vmem %s79_s30, 512  ;;  %s34_s19 = int_to_ptr.vmem [resolvable:$true] %s33_s19 }
  0x14   :  { %p788_p5 = scmp.ne.s32.totalorder %s79_s30, %s787_s1  ;;  %p792_p6 = scmp.lt.s32.totalorder %s79_s30, %s79_s30 }
  0x15   :  { %p793_p7 = scmp.lt.s32.totalorder %s787_s1, %s787_s1 }
  0x17   :  { %46 = dma.hbm_to_vmem [thread:$0]  %s1152_s29, 32, %s44_s25, [#allocation7]  }
  0x18   :  { %p794_p8 = por %p793_p7, %p792_p6 }
  0x1a   :  { %p795_p9 = pnand %p794_p8, %p788_p5 }
  0x1c   :  { %798 = shalt.err (!%p795_p9)
}
  0x1d   :  { %s904_s20 = smov 128   ;;  %s905_s21 = smov 8  }
  0x1e   :  { %84 = dma.hbm_to_vmem [thread:$0]  %s1142_s10, 512, %s79_s30, [#allocation10], %s904_s20, %s904_s20, %s905_s21  }
  0x1f   :  { %s807_s24 = scalar_lea.vmem %s34_s19, 32  ;;  %p812_p11 = scmp.lt.s32.totalorder %s34_s19, %s34_s19 }
  0x20   :  { %p808_p10 = scmp.ne.s32.totalorder %s34_s19, %s807_s24  ;;  %p813_p12 = scmp.lt.s32.totalorder %s807_s24, %s807_s24 }
  0x22   :  { %p814_p13 = por %p813_p12, %p812_p11 }
  0x24   :  { %p815_p0 = pnand %p814_p13, %p808_p10 }
  0x26   :  { %818 = shalt.err (!%p815_p0)
}
  0x27   :  { %s1153_s27 = sld [smem:[#allocation19_spill]]  ;;  %s906_s28 = smov [#allocation8]  }
  0x28   :  { %s52_s29 = sshll.u32 %s906_s28, 4  ;;  %s907_s0 = smov [#allocation11]   ;;  %s53_s29 = int_to_ptr.vmem [resolvable:$true] %s52_s29 }
  0x29   :  { %s90_s18 = sshll.u32 %s907_s0, 4  ;;  %s827_s1 = scalar_lea.vmem %s53_s29, 256  ;;  %s91_s18 = int_to_ptr.vmem [resolvable:$true] %s90_s18 }
  0x2a   :  { %p828_p1 = scmp.ne.s32.totalorder %s53_s29, %s827_s1  ;;  %p832_p2 = scmp.lt.s32.totalorder %s53_s29, %s53_s29 }
  0x2b   :  { %p833_p3 = scmp.lt.s32.totalorder %s827_s1, %s827_s1 }
  0x2d   :  { %36 = dma.hbm_to_vmem [thread:$0]  %s1153_s27, 32, %s34_s19, [#allocation3]  }
  0x2e   :  { %p834_p4 = por %p833_p3, %p832_p2 }
  0x30   :  { %p835_p5 = pnand %p834_p4, %p828_p1 }
  0x32   :  { %838 = shalt.err (!%p835_p5)
}
  0x33   :  { %58 = dma.hbm_to_vmem [thread:$0]  %s1134_s2, 256, %s53_s29, [#allocation7], %s904_s20, %s904_s20, %s905_s21  }
  0x34   :  { %s111_s23 = sshll.u32 %s1148_s16, 4  ;;  %s847_s24 = scalar_lea.vmem %s91_s18, 512  ;;  %s112_s23 = int_to_ptr.vmem [resolvable:$true] %s111_s23 }
  0x35   :  { %p848_p6 = scmp.ne.s32.totalorder %s91_s18, %s847_s24  ;;  %p852_p7 = scmp.lt.s32.totalorder %s91_s18, %s91_s18 }
  0x36   :  { %p853_p8 = scmp.lt.s32.totalorder %s847_s24, %s847_s24 }
  0x38   :  { %p854_p9 = por %p853_p8, %p852_p7 }
  0x3a   :  { %p855_p10 = pnand %p854_p9, %p848_p6 }
  0x3c   :  { %858 = shalt.err (!%p855_p10)
}
  0x3d   :  { %96 = dma.hbm_to_vmem [thread:$0]  %s1143_s11, 512, %s91_s18, [#allocation10], %s904_s20, %s904_s20, %s905_s21  }
  0x3e   :  { %s859_s2 = scalar_lea.vmem %s112_s23, 16  ;;  %p864_p12 = scmp.lt.s32.totalorder %s112_s23, %s112_s23 }
  0x3f   :  { %p860_p11 = scmp.ne.s32.totalorder %s112_s23, %s859_s2  ;;  %p865_p13 = scmp.lt.s32.totalorder %s859_s2, %s859_s2 }
  0x41   :  { %p866_p0 = por %p865_p13, %p864_p12 }
  0x43   :  { %p867_p1 = pnand %p866_p0, %p860_p11 }
  0x45   :  { %870 = shalt.err (!%p867_p1)
}
  0x46   :  { %s908_s16 = smov [#allocation12]  }
  0x47   :  { %114 = dma.vmem_to_smem %s112_s23, 16, %s908_s16, [#allocation5]  }
  0x48   :  { %891 = dma.done.wait [#allocation3], 32  }
  0x49   :  { %892 = vsyncadd [#allocation3], 4294967264 }
  0x4a   :  { %893 = dma.done.wait [#allocation7], 288  }
  0x4b   :  { %894 = vsyncadd [#allocation7], 4294967008 }
  0x4c   :  { %895 = dma.done.wait [#allocation10], 1024  }
  0x4d   :  { %896 = vsyncadd [#allocation10], 4294966272 }
  0x4e   :  { %897 = dma.done.wait [#allocation5], 16  }
  0x4f   :  { %898 = vsyncadd [#allocation5], 4294967280 }
  0x50   :  { %133 = sfence }
  0x51   :  { %v147_v0 = vld [vmem:[#allocation8 + $0x8] sm:$0xf]  ;;  %vm159_vm0 = vcmask 1043456   ;;  %v283_v1 = vld [vmem:[%s1138_s6] sm:$0xf]  ;;  %v909_v2 = vmov 0.0   ;;  %v136_v6 = vlaneseq }
  0x52   :  { %708 = vmatprep.subr.mxu0 %v909_v2  ;;  %715 = vmatprep.subr.mxu1 %v909_v2  ;;  %v135_v3 = vld [vmem:[#allocation6] sm:$0x3]  ;;  %vm291_vm1 = vcmask 31744   ;;  %v146_v4 = vld [vmem:[#allocation8] sm:$0xff]  ;;  %vm910_vm2 = vmmov 0   ;;  %vm155_vm3 = vcmask 97280  }
  0x53   :  { %709 = vmatpush3.msk.msra.mxu0 %vm159_vm0, %v147_v0  ;;  %716 = vmatpush3.msk.msra.mxu1 %vm159_vm0, %v283_v1  ;;  %v134_v5 = vld [vmem:[#allocation2] sm:$0x3]  ;;  %v1041_v7 = vand.u32 127, %v136_v6  ;;  %vm238_vm5 = vcmask 254976   ;;  %v420_v36 = vld [vmem:[#allocation9 + $0x18] sm:$0xff]  ;;  %v419_v37 = vld [vmem:[#allocation9 + $0x10] sm:$0xff] }
  0x54   :  { %717 = vmatprep.mubr.msk.f32.mxu1 %vm910_vm2, %v909_v2  ;;  %710 = vmatprep.subr.mxu0 %v909_v2  ;;  %v681_v8 = vld [vmem:[%s1139_s7] ss:$0 sm:$0xff]  ;;  %v424_v38 = vld [vmem:[#allocation11 + $0x18] sm:$0xff]  ;;  %v423_v39 = vld [vmem:[#allocation11 + $0x10] sm:$0xff]  ;;  %vm425_vm6 = vcmask 261120   ;;  %vm585_vm8 = vcmask 517120  }
  0x55   :  { %718 = vmatmul.mubr.msk.f32.vlgmr.msra.gmra.mxu1 %vm291_vm1, %v135_v3  ;;  %711 = vmatpush3.msra.mxu0 %v146_v4  ;;  %vm138_vm4 = vcmp.lt.s32.totalorder %v1041_v7, 16  ;;  %v676_v10 = vld [vmem:[%s1135_s3] ss:$0 sm:$0xff]  ;;  %v417_v41 = vld [vmem:[#allocation9] sm:$0xff]  ;;  %vm142_vm7 = vcmp.lt.s32.totalorder %v1041_v7, 32  ;;  %s642_s24 = sld [smem:[#allocation12]] }
  0x56   :  { %712 = vmatprep.mubr.msk.f32.mxu0 %vm910_vm2, %v909_v2  ;;  %731 = vmatprep.subr.mxu0 %v909_v2  ;;  %v1051_v14 = vsel %vm138_vm4, 1.0, %v909_v2  ;;  %v418_v40 = vld [vmem:[#allocation9 + $0x8] sm:$0xff]  ;;  %v421_v43 = vld [vmem:[#allocation11] sm:$0xff]  ;;  %vm652_vm9 = vcmp.eq.s32.totalorder %v1041_v7, 0  ;;  %vm654_vm10 = vcmask 9216  }
  0x57   :  { %713 = vmatmul.mubr.msk.f32.vlgmr.msra.gmra.mxu0 %vm155_vm3, %v134_v5  ;;  %720 = vmatprep.subr.mxu1 %v909_v2  ;;  %v1060_v20 = vsub.f32 1.0, %v1051_v14  ;;  %v422_v42 = vld [vmem:[#allocation11 + $0x8] sm:$0xff] }
  0x58   :  { %739 = vmatprep.mubr.msk.f32.mxu0 %vm910_vm2, %v909_v2  ;;  %728 = vmatprep.mubr.msk.f32.mxu1 %vm910_vm2, %v909_v2 }
  0x59   :  { %732 = vmatpush3.msra.mxu0 %v420_v36  ;;  %721 = vmatpush3.msra.mxu1 %v424_v38 }
  0x5a   :  { %733 = vmatprep.subr.mxu0 %v909_v2  ;;  %722 = vmatprep.subr.mxu1 %v909_v2 }
  0x5b   :  { %734 = vmatpush3.msra.mxu0 %v419_v37  ;;  %723 = vmatpush3.msra.mxu1 %v423_v39 }
  0x5c   :  { %735 = vmatprep.subr.mxu0 %v909_v2  ;;  %724 = vmatprep.subr.mxu1 %v909_v2 }
  0x5d   :  { %736 = vmatpush3.msra.mxu0 %v418_v40  ;;  %725 = vmatpush3.msra.mxu1 %v422_v42 }
  0x5e   :  { %737 = vmatprep.subr.mxu0 %v909_v2  ;;  %726 = vmatprep.subr.mxu1 %v909_v2 }
  0x5f   :  { %738 = vmatpush3.msra.mxu0 %v417_v41  ;;  %727 = vmatpush3.msra.mxu1 %v421_v43 }
 0x115   :  { %v364_v9 = vpop.f32.mrf.mxu1 }
 0x116   :  { %v365_v11 = vadd.f32 %v681_v8, %v364_v9 }
 0x117   :  { %v229_v12 = vpop.f32.mrf.mxu0  ;;  %v719_v13 = vpop.f32.mrf.mxu1 }
 0x118   :  { %v1053_v15 = vmax.f32 %v365_v11, 0.0  ;;  %v230_v16 = vadd.f32 %v676_v10, %v229_v12 }
 0x119   :  { %v714_v17 = vpop.f32.mrf.mxu0 }
 0x11a   :  { %v1055_v18 = vmax.f32 %v230_v16, 0.0  ;;  %v371_v19 = vmul.f32 %v1051_v14, %v1053_v15  ;;  %v372_v25 = vmul.f32 %v1053_v15, %v1060_v20 }
 0x11c   :  { %v373_v21 = vsel %vm238_vm5, %v371_v19, 0.0  ;;  %v236_v22 = vmul.f32 %v1051_v14, %v1055_v18  ;;  %v237_v23 = vmul.f32 %v1055_v18, %v1060_v20  ;;  %v377_v26 = vsel %vm238_vm5, %v372_v25, 0.0 }
 0x11d   :  { %374 = vadd.xlane.f32.xlu1 %v373_v21  ;;  %v386_v31 = vmul.f32 %v372_v25, %v1053_v15  ;;  %v381_v33 = vmul.f32 %v371_v19, %v1053_v15 }
 0x11e   :  { %v239_v24 = vsel %vm238_vm5, %v236_v22, 0.0  ;;  %v252_v27 = vmul.f32 %v237_v23, %v1055_v18  ;;  %v243_v28 = vsel %vm238_vm5, %v237_v23, 0.0  ;;  %v247_v29 = vmul.f32 %v236_v22, %v1055_v18  ;;  %v679_v22 = vld [vmem:[%s1136_s4] ss:$0 sm:$0xff] }
 0x11f   :  { %240 = vadd.xlane.f32.xlu0 %v239_v24  ;;  %v387_v34 = vsel %vm238_vm5, %v386_v31, 0.0  ;;  %v382_v35 = vsel %vm238_vm5, %v381_v33, 0.0  ;;  %v688_v33 = vld [vmem:[%s1144_s12] ss:$0 sm:$0xff] }
 0x120   :  { %v253_v30 = vsel %vm238_vm5, %v252_v27, 0.0  ;;  %v248_v32 = vsel %vm238_vm5, %v247_v29, 0.0 }
 0x121   :  { %378 = vadd.xlane.f32.xlu1 %v377_v26  ;;  %v684_v26 = vld [vmem:[%s1140_s8] ss:$0 sm:$0xff] }
 0x123   :  { %244 = vadd.xlane.f32.xlu0 %v243_v28  ;;  %v685_v28 = vld [vmem:[%s1141_s9] ss:$0 sm:$0xff] }
 0x125   :  { %254 = vadd.xlane.f32.xlu1 %v253_v30 }
 0x127   :  { %249 = vadd.xlane.f32.xlu0 %v248_v32 }
 0x129   :  { %388 = vadd.xlane.f32.xlu1 %v387_v34  ;;  %v675_v34 = vsel %vm142_vm7, 1.0, %v909_v2 }
 0x12a   :  { %v145_v38 = vsub.f32 1.0, %v675_v34 }
 0x12b   :  { %383 = vadd.xlane.f32.xlu0 %v382_v35 }
 0x1a6   :  { %v375_v44 = vpop.xlane.xlu1 %374 }
 0x1a7   :  { %v376_v52 = vmul.f32 0.0625, %v375_v44 }
 0x1a8   :  { %v241_v45 = vpop.xlane.xlu0 %240 }
 0x1a9   :  { %v242_v47 = vmul.f32 0.0625, %v241_v45  ;;  %v391_v61 = vmul.f32 %v1051_v14, %v376_v52 }
 0x1aa   :  { %v379_v46 = vpop.xlane.xlu1 %378 }
 0x1ab   :  { %v380_v49 = vmul.f32 0.0625, %v379_v46  ;;  %v257_v54 = vmul.f32 %v1051_v14, %v242_v47 }
 0x1ac   :  { %v245_v48 = vpop.xlane.xlu0 %244 }
 0x1ad   :  { %v246_v50 = vmul.f32 0.0625, %v245_v48  ;;  %v392_v57 = vmul.f32 %v380_v49, %v1060_v20 }
 0x1ae   :  { %v255_v51 = vpop.xlane.xlu1 %254 }
 0x1af   :  { %v258_v53 = vmul.f32 %v246_v50, %v1060_v20  ;;  %v256_v55 = vmul.f32 0.0625, %v255_v51  ;;  %v393_v3 = vadd.f32 %v392_v57, %v391_v61 }
 0x1b0   :  { %v250_v56 = vpop.xlane.xlu0 %249 }
 0x1b1   :  { %v259_v58 = vadd.f32 %v258_v53, %v257_v54  ;;  %v251_v59 = vmul.f32 0.0625, %v250_v56  ;;  %v261_v63 = vmul.f32 %v256_v55, %v1060_v20  ;;  %v397_v11 = vmul.f32 %v393_v3, %v393_v3 }
 0x1b2   :  { %v389_v60 = vpop.xlane.xlu1 %388 }
 0x1b3   :  { %v390_v62 = vmul.f32 0.0625, %v389_v60  ;;  %v260_v0 = vmul.f32 %v1051_v14, %v251_v59  ;;  %v263_v5 = vmul.f32 %v259_v58, %v259_v58  ;;  %v265_v19 = vsub.f32 %v1055_v18, %v259_v58 }
 0x1b4   :  { %v384_v1 = vpop.xlane.xlu0 %383 }
 0x1b5   :  { %v385_v4 = vmul.f32 0.0625, %v384_v1  ;;  %v262_v6 = vadd.f32 %v261_v63, %v260_v0  ;;  %v395_v8 = vmul.f32 %v390_v62, %v1060_v20  ;;  %v399_v20 = vsub.f32 %v1053_v15, %v393_v3  ;;  %v689_v3 = vld [vmem:[%s1145_s13] ss:$0 sm:$0xff]  ;;  %s692_s13 = sld [smem:[#allocation12 + $0x1]] }
 0x1b7   :  { %v394_v9 = vmul.f32 %v1051_v14, %v385_v4  ;;  %v264_v10 = vsub.f32 %v262_v6, %v263_v5  ;;  %v680_v14 = vld [vmem:[%s1137_s5] ss:$0 sm:$0xff] }
 0x1b8   :  { %v690_v5 = vld [vmem:[%s1146_s14] ss:$0 sm:$0xff]  ;;  %s911_s14 = smov [#allocation13]  }
 0x1b9   :  { %v396_v12 = vadd.f32 %v395_v8, %v394_v9  ;;  %v266_v13 = vadd.f32 1e-05, %v264_v10  ;;  %v691_v8 = vld [vmem:[%s1147_s15] ss:$0 sm:$0xff]  ;;  %s662_s25 = sshll.u32 %s911_s14, 4  ;;  %s663_s25 = int_to_ptr.vmem [resolvable:$true] %s662_s25 }
 0x1ba   :  { %s871_s15 = scalar_lea.vmem %s663_s25, 32  ;;  %p876_p3 = scmp.lt.s32.totalorder %s663_s25, %s663_s25 }
 0x1bb   :  { %v398_v16 = vsub.f32 %v396_v12, %v397_v11  ;;  %753 = vrsqrt.f32 %v266_v13  ;;  %p872_p2 = scmp.ne.s32.totalorder %s663_s25, %s871_s15  ;;  %p877_p4 = scmp.lt.s32.totalorder %s871_s15, %s871_s15 }
 0x1bd   :  { %v400_v17 = vadd.f32 1e-05, %v398_v16  ;;  %p878_p5 = por %p877_p4, %p876_p3 }
 0x1bf   :  { %755 = vrsqrt.f32 %v400_v17  ;;  %v650_v17 = vstv %s692_s13  ;;  %p879_p6 = pnand %p878_p5, %p872_p2 }
 0x1c8   :  { %v754_v21 = vpop.eup %753 }
 0x1c9   :  { %v268_v23 = vmul.f32 %v754_v21, %v265_v19  ;;  %v643_v19 = vstv %s642_s24 }
 0x1cb   :  { %v275_v25 = vmul.f32 %v679_v22, %v268_v23 }
 0x1cc   :  { %v756_v24 = vpop.eup %755 }
 0x1cd   :  { %v402_v18 = vmul.f32 %v756_v24, %v399_v20  ;;  %v282_v27 = vadd.f32 %v680_v14, %v275_v25 }
 0x1cf   :  { %v409_v29 = vmul.f32 %v684_v26, %v402_v18  ;;  %740 = vmatmul.mubr.msk.f32.vlgmr.msra.gmra.mxu0 %vm425_vm6, %v282_v27 }
 0x1d1   :  { %v416_v15 = vadd.f32 %v685_v28, %v409_v29 }
 0x1d3   :  { %729 = vmatmul.mubr.msk.f32.vlgmr.msra.gmra.mxu1 %vm425_vm6, %v416_v15 }
 0x28f   :  { %v568_v30 = vpop.f32.mrf.mxu0 }
 0x291   :  { %v741_v31 = vpop.f32.mrf.mxu0 }
 0x293   :  { %v495_v32 = vpop.f32.mrf.mxu1 }
 0x294   :  { %v569_v35 = vadd.f32 %v568_v30, %v495_v32 }
 0x295   :  { %v730_v36 = vpop.f32.mrf.mxu1 }
 0x296   :  { %v579_v37 = vadd.f32 %v688_v33, %v569_v35 }
 0x298   :  { %v580_v39 = vmax.f32 %v579_v37, 0.0 }
 0x29a   :  { %v584_v40 = vmul.f32 %v580_v39, %v145_v38  ;;  %v583_v41 = vmul.f32 %v675_v34, %v580_v39 }
 0x29c   :  { %v590_v42 = vsel %vm585_vm8, %v584_v40, 0.0  ;;  %v586_v43 = vsel %vm585_vm8, %v583_v41, 0.0  ;;  %v599_v44 = vmul.f32 %v584_v40, %v580_v39  ;;  %v594_v45 = vmul.f32 %v583_v41, %v580_v39 }
 0x29d   :  { %591 = vadd.xlane.f32.xlu1 %v590_v42  ;;  %587 = vadd.xlane.f32.xlu0 %v586_v43 }
 0x29e   :  { %v600_v46 = vsel %vm585_vm8, %v599_v44, 0.0  ;;  %v595_v2 = vsel %vm585_vm8, %v594_v45, 0.0 }
 0x2a1   :  { %601 = vadd.xlane.f32.xlu1 %v600_v46  ;;  %596 = vadd.xlane.f32.xlu0 %v595_v2 }
 0x326   :  { %v592_v47 = vpop.xlane.xlu1 %591  ;;  %v588_v48 = vpop.xlane.xlu0 %587 }
 0x327   :  { %v593_v49 = vmul.f32 0.03125, %v592_v47  ;;  %v589_v50 = vmul.f32 0.03125, %v588_v48 }
 0x329   :  { %v605_v51 = vmul.f32 %v593_v49, %v145_v38  ;;  %v604_v52 = vmul.f32 %v675_v34, %v589_v50 }
 0x32a   :  { %v602_v53 = vpop.xlane.xlu1 %601  ;;  %v597_v54 = vpop.xlane.xlu0 %596 }
 0x32b   :  { %v606_v55 = vadd.f32 %v605_v51, %v604_v52  ;;  %v603_v56 = vmul.f32 0.03125, %v602_v53  ;;  %v598_v57 = vmul.f32 0.03125, %v597_v54 }
 0x32d   :  { %v608_v58 = vmul.f32 %v603_v56, %v145_v38  ;;  %v607_v59 = vmul.f32 %v675_v34, %v598_v57  ;;  %v610_v60 = vmul.f32 %v606_v55, %v606_v55  ;;  %v612_v0 = vsub.f32 %v580_v39, %v606_v55 }
 0x32f   :  { %v609_v61 = vadd.f32 %v608_v58, %v607_v59 }
 0x331   :  { %v611_v62 = vsub.f32 %v609_v61, %v610_v60 }
 0x333   :  { %v613_v63 = vadd.f32 1e-05, %v611_v62 }
 0x335   :  { %757 = vrsqrt.f32 %v613_v63 }
 0x342   :  { %v758_v1 = vpop.eup %757 }
 0x343   :  { %v615_v4 = vmul.f32 %v758_v1, %v612_v0 }
 0x345   :  { %v622_v6 = vmul.f32 %v689_v3, %v615_v4 }
 0x347   :  { %v629_v9 = vadd.f32 %v690_v5, %v622_v6 }
 0x349   :  { %v637_v10 = vmul.f32 %v691_v8, %v629_v9 }
 0x34b   :  { %v645_v11 = vmul.f32 %v637_v10, %v145_v38  ;;  %v638_v12 = vmul.f32 %v675_v34, %v637_v10 }
 0x34d   :  { %v646_v13 = vsel %vm585_vm8, %v645_v11, 0.0  ;;  %v639_v16 = vsel %vm585_vm8, %v638_v12, 0.0 }
 0x34e   :  { %647 = vadd.xlane.f32.xlu1 %v646_v13  ;;  %640 = vadd.xlane.f32.xlu0 %v639_v16 }
 0x3d7   :  { %v648_v21 = vpop.xlane.xlu1 %647  ;;  %v641_v22 = vpop.xlane.xlu0 %640 }
 0x3d8   :  { %v651_v23 = vadd.f32 %v650_v17, %v648_v21  ;;  %v644_v20 = vadd.f32 %v643_v19, %v641_v22 }
 0x3da   :  { %v653_v14 = vsel %vm652_vm9, %v644_v20, %v651_v23 }
 0x3db   :  { %655 = vst.msk [vmem:[#allocation13] sm:$0x3] %vm654_vm10, %v653_v14 }
 0x3dc   :  { %882 = shalt.err (!%p879_p6)
}
 0x3dd   :  { %665 = dma.vmem_to_hbm [thread:$0]  %s663_s25, 32, %s1149_s17, [#allocation4]  }
 0x3de   :  { %899 = dma.done.wait [#allocation4], 32  }
 0x3df   :  { %900 = vsyncadd [#allocation4], 4294967264 }
 0x3e0   :  { %669 = vsyncpa [#allocation3], 1 }
 0x3e1   :  { %670 = vsyncpa [#allocation7], 1 }
 0x3e2   :  { %671 = vsyncpa [#allocation10], 1 }
 0x3e3   :  { %672 = vsyncpa [#allocation4], 1 }
 0x3e4   :  { %673 = vsyncpa [#allocation5], 1 }

</bundles_post_ra>
